<compile_context>
chip_gen: v6e
topology: v6e:2x2x1
jax: 0.10.0
libtpu: 0.0.40
codegen_flags: <defaults>
</compile_context>

<pallas_src>
import functools

import jax
import jax.numpy as jnp
from jax.experimental import pallas as pl
from jax.experimental.pallas import tpu as pltpu


def _round_up(n, m):
    return ((n + m - 1) // m) * m


def _tpu_kind():
    try:
        return jax.devices()[0].device_kind.lower()
    except Exception:  # non-TPU / query failure: fall back to safe defaults
        return ""


def _use_bf16_epilogue(kind=None):
    """bf16 bias+ELU only on chips with a bf16 VPU/EUP (v6e / v7x)."""
    kind = _tpu_kind() if kind is None else kind
    return ("v5" not in kind) and ("v4" not in kind)


def _num_tensorcores(kind=None):
    """v7x has 2 TensorCores per chip; the parallel grid axis shards over them."""
    kind = _tpu_kind() if kind is None else kind
    return 2 if "v7" in kind else 1


def _default_tile_b(kind=None):
    """Big tiles amortize per-step overhead; cap on v5e (single vector-store
    slot + f32 intermediates spill through vst earlier)."""
    kind = _tpu_kind() if kind is None else kind
    return 512 if "v5" in kind else 1024


def _elu(h):
    # ELU(alpha=1) in h's dtype.  The min() guards the unselected exp branch
    # against overflow on large positive inputs AND on the uninitialized
    # padding rows of a partial final batch block -- do not remove it.
    return jnp.where(h > 0.0, h, jnp.exp(jnp.minimum(h, 0.0)) - 1.0)


def _emlp_kernel(x_ref, w1_ref, b1_ref, w2_ref, b2_ref, w3_ref, b3_ref, o_ref,
                 *, bf16_epilogue):
    ep = jnp.bfloat16 if bf16_epilogue else jnp.float32
    # Layer 1: Linear (bf16 operands, f32 MXU accumulate) + bias + ELU.
    x = x_ref[...].astype(jnp.bfloat16)
    h1 = jnp.dot(x, w1_ref[...], preferred_element_type=jnp.float32)
    h1 = _elu(h1.astype(ep) + b1_ref[...].astype(ep))
    # Layer 2: Linear + bias + ELU.
    h2 = jnp.dot(h1.astype(jnp.bfloat16), w2_ref[...],
                 preferred_element_type=jnp.float32)
    h2 = _elu(h2.astype(ep) + b2_ref[...].astype(ep))
    # Head: Linear to the (lane-padded) output type + bias, no activation.
    out = jnp.dot(h2.astype(jnp.bfloat16), w3_ref[...],
                  preferred_element_type=jnp.float32)
    o_ref[...] = (out.astype(ep) + b3_ref[...].astype(ep)).astype(o_ref.dtype)


def _pick_tile(batch, tile_b, num_cores):
    """Rows per grid step."""
    # At least `num_cores` grid steps when the batch is big enough to split,
    # so dimension_semantics=("parallel",) shards across TensorCores (v7x has
    # 2 per chip); otherwise one big tile amortizes per-step overhead.
    min_steps = num_cores if (num_cores > 1 and batch >= 16) else 1
    per_step = -(-batch // min_steps)
    tile = min(tile_b, _round_up(per_step, 8))
    if tile >= batch:
        # Single grid step covering the whole (small) batch.
        return max(_round_up(batch, 8), 8)
    # Multiple grid steps: keep the tile a multiple of 16 so the bf16 output
    # block respects the native (16, 128) sublane tiling.
    return _round_up(tile, 16)


def _build_call(batch, in_dim, hidden1, hidden2, feat_pad, tile,
                bf16_epilogue, single_buffer_weights):
    kernel = functools.partial(_emlp_kernel, bf16_epilogue=bf16_epilogue)
    grid = (pl.cdiv(batch, tile),)

    def const_spec(shape):
        # Weights / biases: full arrays, constant block index -> VMEM-resident
        # across the grid.  Single-buffered when supported (they never change,
        # so the default second pipeline buffer is pure overhead).
        if single_buffer_weights:
            return pl.BlockSpec(shape, lambda i: (0, 0),
                                pipeline_mode=pl.Buffered(buffer_count=1))
        return pl.BlockSpec(shape, lambda i: (0, 0))

    # Advisory cost estimate for the XLA scheduler.
    flops = 2 * batch * (in_dim * hidden1 + hidden1 * hidden2
                         + hidden2 * feat_pad)
    transcendentals = batch * (hidden1 + hidden2)       # one exp per ELU elem
    bytes_accessed = (batch * in_dim * 4
                      + (in_dim * hidden1 + hidden1 * hidden2
                         + hidden2 * feat_pad) * 2
                      + (hidden1 + hidden2 + feat_pad) * 4
                      + batch * feat_pad * 2)           # bf16 output stream

    return pl.pallas_call(
        kernel,
        out_shape=jax.ShapeDtypeStruct((batch, feat_pad), jnp.bfloat16),
        grid_spec=pltpu.PrefetchScalarGridSpec(
            num_scalar_prefetch=0,
            grid=grid,
            in_specs=[
                # activations: tiled over the batch (partial last block masked)
                pl.BlockSpec((tile, in_dim), lambda i: (i, 0)),
                const_spec((in_dim, hidden1)),
                const_spec((1, hidden1)),
                const_spec((hidden1, hidden2)),
                const_spec((1, hidden2)),
                const_spec((hidden2, feat_pad)),
                const_spec((1, feat_pad)),
            ],
            out_specs=pl.BlockSpec((tile, feat_pad), lambda i: (i, 0)),
        ),
        compiler_params=pltpu.CompilerParams(
            dimension_semantics=("parallel",),
        ),
        cost_estimate=pl.CostEstimate(
            flops=flops,
            transcendentals=transcendentals,
            bytes_accessed=bytes_accessed,
        ),
    )


# Lazily probed: does this jax/Mosaic accept pl.Buffered(1) on constant blocks?
_SINGLE_BUFFER_OK = None


def cartpole_encoder_forward(x, params, feature_size, *, tile_b=None,
                             slice_output=False):
    """Fused EMLP forward.

    x:       (B, in_dim) float32
    params:  dict with bf16 weights w1 (in,H1), w2 (H1,H2), w3 (H2,Fpad) and
             f32 biases b1 (1,H1), b2 (1,H2), b3 (1,Fpad); Fpad is a multiple
             of 128 with zero padding beyond `feature_size`.
    returns: (B, Fpad) bfloat16 lane-padded logits by default (index the first
             `feature_size` columns downstream -- that slice fuses into the
             consumer); the dense (B, feature_size) view if slice_output=True.
    """
    global _SINGLE_BUFFER_OK

    w1, b1 = params["w1"], params["b1"]
    w2, b2 = params["w2"], params["b2"]
    w3, b3 = params["w3"], params["b3"]

    batch, in_dim = x.shape
    hidden1 = w1.shape[1]
    hidden2 = w2.shape[1]
    feat_pad = w3.shape[1]
    assert feat_pad % 128 == 0, "output dim must be padded to a lane multiple"

    kind = _tpu_kind()
    if tile_b is None:
        tile_b = _default_tile_b(kind)
    tile = _pick_tile(batch, tile_b, _num_tensorcores(kind))
    bf16_ep = _use_bf16_epilogue(kind)

    args = (x, w1, b1, w2, b2, w3, b3)
    build = functools.partial(_build_call, batch, in_dim, hidden1, hidden2,
                              feat_pad, tile, bf16_ep)

    if _SINGLE_BUFFER_OK is None:
        try:
            out = build(single_buffer_weights=True)(*args)
            _SINGLE_BUFFER_OK = True
        except Exception:
            # This jax/Mosaic version rejects pl.Buffered(1); fall back to the
            # default (double-buffered, still fetched-once) weight blocks.
            _SINGLE_BUFFER_OK = False
            out = build(single_buffer_weights=False)(*args)
    else:
        out = build(single_buffer_weights=_SINGLE_BUFFER_OK)(*args)

    if slice_output:
        return out[:, :feature_size]
    return out


def init_params(key, in_dim, hidden, feature_size):
    """Deterministic synthetic EMLP parameters.

    Weights stored transposed as (in, out) in bf16 (matmul operands); biases
    in f32 (cast to the epilogue dtype inside the kernel).  The head (w3/b3)
    last dim is zero-padded to a multiple of 128 so the output is lane-dense.
    """
    feat_pad = _round_up(feature_size, 128)
    dims_in = [in_dim, hidden, hidden]
    dims_out = [hidden, hidden, feature_size]
    out_pad = [hidden, hidden, feat_pad]

    params = {}
    for li in range(3):
        key, kw, kb = jax.random.split(key, 3)
        fan_in = dims_in[li]
        scale = 1.0 / jnp.sqrt(jnp.float32(fan_in))
        w = (jax.random.uniform(kw, (dims_in[li], dims_out[li]),
                                minval=-1.0, maxval=1.0) * scale)
        b = (jax.random.uniform(kb, (1, dims_out[li]),
                                minval=-1.0, maxval=1.0) * scale)
        pad = out_pad[li] - dims_out[li]
        if pad:
            w = jnp.pad(w, ((0, 0), (0, pad)))
            b = jnp.pad(b, ((0, 0), (0, pad)))
        params[f"w{li + 1}"] = w.astype(jnp.bfloat16)
        params[f"b{li + 1}"] = b.astype(jnp.float32)
    return params


def reference_forward(x, params, feature_size, *, bf16_epilogue):
    """Pure-JAX reference with numerics matching the kernel."""
    bf = jnp.bfloat16
    ep = jnp.bfloat16 if bf16_epilogue else jnp.float32
    h = jnp.dot(x.astype(bf), params["w1"], preferred_element_type=jnp.float32)
    h = _elu(h.astype(ep) + params["b1"].astype(ep))
    h = jnp.dot(h.astype(bf), params["w2"], preferred_element_type=jnp.float32)
    h = _elu(h.astype(ep) + params["b2"].astype(ep))
    out = jnp.dot(h.astype(bf), params["w3"], preferred_element_type=jnp.float32)
    out = (out.astype(ep) + params["b3"].astype(ep)).astype(jnp.bfloat16)
    return out[:, :feature_size]


if __name__ == "__main__":
    # Small, cartpole-consistent shapes: obs dim 4, EMLP hidden 256,
    # categorical output of size 2 (lane-padded to 128 inside the kernel).
    batch = 8
    in_dim = 4
    hidden = 256
    feature_size = 2
    feat_pad = _round_up(feature_size, 128)

    key = jax.random.PRNGKey(0)
    key, kx = jax.random.split(key)
    x = jax.random.normal(kx, (batch, in_dim), dtype=jnp.float32)

    params = init_params(key, in_dim, hidden, feature_size)

    out_padded = cartpole_encoder_forward(x, params, feature_size)
    out_padded = jax.block_until_ready(out_padded)
    # Consumer-side indexing of the lane-padded bf16 output (fuses downstream).
    out = out_padded[:, :feature_size].astype(jnp.float32)

    ref = reference_forward(
        x, params, feature_size,
        bf16_epilogue=_use_bf16_epilogue()).astype(jnp.float32)

    assert out_padded.shape == (batch, feat_pad), out_padded.shape
    assert out.shape == (batch, feature_size), out.shape
    assert jnp.allclose(out, ref, atol=2e-2, rtol=2e-2), \
        float(jnp.max(jnp.abs(out - ref)))

    print("KERNEL_OK")
</pallas_src>

<mosaic_0001>
module attributes {stable_mosaic.version = 11 : i64} {
  func.func @_emlp_kernel(%arg0: i32, %arg1: memref<8x4xf32, #tpu.memory_space<vmem>>, %arg2: memref<4x256xbf16, #tpu.memory_space<vmem>>, %arg3: memref<1x256xf32, #tpu.memory_space<vmem>>, %arg4: memref<256x256xbf16, #tpu.memory_space<vmem>>, %arg5: memref<1x256xf32, #tpu.memory_space<vmem>>, %arg6: memref<256x128xbf16, #tpu.memory_space<vmem>>, %arg7: memref<1x128xf32, #tpu.memory_space<vmem>>, %arg8: memref<8x128xbf16, #tpu.memory_space<vmem>>) attributes {dimension_semantics = [#tpu.dimension_semantics<parallel>], iteration_bounds = array<i64: 1>, scalar_prefetch = 0 : i64, scratch_operands = 0 : i64, tpu.core_type = #tpu.core_type<tc>, window_params = [{transform_indices = @transform_0, window_bounds = array<i64: 8, 4>}, {pipeline_mode = #tpu.pipeline_mode<synchronous>, transform_indices = @transform_1, window_bounds = array<i64: 4, 256>}, {pipeline_mode = #tpu.pipeline_mode<synchronous>, transform_indices = @transform_2, window_bounds = array<i64: 1, 256>}, {pipeline_mode = #tpu.pipeline_mode<synchronous>, transform_indices = @transform_3, window_bounds = array<i64: 256, 256>}, {pipeline_mode = #tpu.pipeline_mode<synchronous>, transform_indices = @transform_4, window_bounds = array<i64: 1, 256>}, {pipeline_mode = #tpu.pipeline_mode<synchronous>, transform_indices = @transform_5, window_bounds = array<i64: 256, 128>}, {pipeline_mode = #tpu.pipeline_mode<synchronous>, transform_indices = @transform_6, window_bounds = array<i64: 1, 128>}, {transform_indices = @transform_7, window_bounds = array<i64: 8, 128>}]} {
    %c0 = arith.constant 0 : index
    %c0_0 = arith.constant 0 : index
    %0 = vector.load %arg1[%c0, %c0_0] : memref<8x4xf32, #tpu.memory_space<vmem>>, vector<8x4xf32>
    %1 = arith.truncf %0 : vector<8x4xf32> to vector<8x4xbf16>
    %c0_1 = arith.constant 0 : index
    %c0_2 = arith.constant 0 : index
    %2 = vector.load %arg2[%c0_1, %c0_2] : memref<4x256xbf16, #tpu.memory_space<vmem>>, vector<4x256xbf16>
    %cst = arith.constant dense<0.000000e+00> : vector<8x256xf32>
    %3 = tpu.matmul %1, %2, %cst {dimension_numbers = #tpu.dot_dimension_numbers<[1], [0], [0], [1], [0, 0, 1, 1], [], []>} : vector<8x4xbf16>, vector<4x256xbf16>, vector<8x256xf32> -> vector<8x256xf32>
    %4 = arith.truncf %3 : vector<8x256xf32> to vector<8x256xbf16>
    %c0_3 = arith.constant 0 : index
    %c0_4 = arith.constant 0 : index
    %5 = vector.load %arg3[%c0_3, %c0_4] : memref<1x256xf32, #tpu.memory_space<vmem>>, vector<1x256xf32>
    %6 = arith.truncf %5 : vector<1x256xf32> to vector<1x256xbf16>
    %7 = vector.broadcast %6 : vector<1x256xbf16> to vector<8x256xbf16>
    %8 = arith.addf %4, %7 : vector<8x256xbf16>
    %cst_5 = arith.constant 0.000000e+00 : bf16
    %9 = vector.broadcast %cst_5 : bf16 to vector<8x256xbf16>
    %10 = arith.cmpf ogt, %8, %9 : vector<8x256xbf16>
    %cst_6 = arith.constant 0.000000e+00 : bf16
    %11 = vector.broadcast %cst_6 : bf16 to vector<8x256xbf16>
    %12 = arith.minimumf %8, %11 : vector<8x256xbf16>
    %13 = math.exp %12 : vector<8x256xbf16>
    %cst_7 = arith.constant 1.000000e+00 : bf16
    %14 = vector.broadcast %cst_7 : bf16 to vector<8x256xbf16>
    %15 = arith.subf %13, %14 : vector<8x256xbf16>
    %16 = arith.select %10, %8, %15 : vector<8x256xi1>, vector<8x256xbf16>
    %c0_8 = arith.constant 0 : index
    %c0_9 = arith.constant 0 : index
    %17 = vector.load %arg4[%c0_8, %c0_9] : memref<256x256xbf16, #tpu.memory_space<vmem>>, vector<256x256xbf16>
    %cst_10 = arith.constant dense<0.000000e+00> : vector<8x256xf32>
    %18 = tpu.matmul %16, %17, %cst_10 {dimension_numbers = #tpu.dot_dimension_numbers<[1], [0], [0], [1], [0, 0, 1, 1], [], []>} : vector<8x256xbf16>, vector<256x256xbf16>, vector<8x256xf32> -> vector<8x256xf32>
    %19 = arith.truncf %18 : vector<8x256xf32> to vector<8x256xbf16>
    %c0_11 = arith.constant 0 : index
    %c0_12 = arith.constant 0 : index
    %20 = vector.load %arg5[%c0_11, %c0_12] : memref<1x256xf32, #tpu.memory_space<vmem>>, vector<1x256xf32>
    %21 = arith.truncf %20 : vector<1x256xf32> to vector<1x256xbf16>
    %22 = vector.broadcast %21 : vector<1x256xbf16> to vector<8x256xbf16>
    %23 = arith.addf %19, %22 : vector<8x256xbf16>
    %cst_13 = arith.constant 0.000000e+00 : bf16
    %24 = vector.broadcast %cst_13 : bf16 to vector<8x256xbf16>
    %25 = arith.cmpf ogt, %23, %24 : vector<8x256xbf16>
    %cst_14 = arith.constant 0.000000e+00 : bf16
    %26 = vector.broadcast %cst_14 : bf16 to vector<8x256xbf16>
    %27 = arith.minimumf %23, %26 : vector<8x256xbf16>
    %28 = math.exp %27 : vector<8x256xbf16>
    %cst_15 = arith.constant 1.000000e+00 : bf16
    %29 = vector.broadcast %cst_15 : bf16 to vector<8x256xbf16>
    %30 = arith.subf %28, %29 : vector<8x256xbf16>
    %31 = arith.select %25, %23, %30 : vector<8x256xi1>, vector<8x256xbf16>
    %c0_16 = arith.constant 0 : index
    %c0_17 = arith.constant 0 : index
    %32 = vector.load %arg6[%c0_16, %c0_17] : memref<256x128xbf16, #tpu.memory_space<vmem>>, vector<256x128xbf16>
    %cst_18 = arith.constant dense<0.000000e+00> : vector<8x128xf32>
    %33 = tpu.matmul %31, %32, %cst_18 {dimension_numbers = #tpu.dot_dimension_numbers<[1], [0], [0], [1], [0, 0, 1, 1], [], []>} : vector<8x256xbf16>, vector<256x128xbf16>, vector<8x128xf32> -> vector<8x128xf32>
    %34 = arith.truncf %33 : vector<8x128xf32> to vector<8x128xbf16>
    %c0_19 = arith.constant 0 : index
    %c0_20 = arith.constant 0 : index
    %35 = vector.load %arg7[%c0_19, %c0_20] : memref<1x128xf32, #tpu.memory_space<vmem>>, vector<1x128xf32>
    %36 = arith.truncf %35 : vector<1x128xf32> to vector<1x128xbf16>
    %37 = vector.broadcast %36 : vector<1x128xbf16> to vector<8x128xbf16>
    %38 = arith.addf %34, %37 : vector<8x128xbf16>
    %c0_21 = arith.constant 0 : index
    %c0_22 = arith.constant 0 : index
    %39 = vector.load %arg8[%c0_21, %c0_22] : memref<8x128xbf16, #tpu.memory_space<vmem>>, vector<8x128xbf16>
    tpu.vector_store %arg8[%c0_21, %c0_22], %38 {strides = array<i32>} : memref<8x128xbf16, #tpu.memory_space<vmem>>, vector<8x128xbf16>,
    return
  }
  func.func @transform_0(%arg0: i32) -> (i32, i32) {
    %c0_i32 = arith.constant 0 : i32
    %c0_i32_0 = arith.constant 0 : i32
    return %arg0, %c0_i32 : i32, i32
  }
  func.func @transform_1(%arg0: i32) -> (i32, i32) {
    %c0_i32 = arith.constant 0 : i32
    %c0_i32_0 = arith.constant 0 : i32
    %c0_i32_1 = arith.constant 0 : i32
    return %c0_i32, %c0_i32_0 : i32, i32
  }
  func.func @transform_2(%arg0: i32) -> (i32, i32) {
    %c0_i32 = arith.constant 0 : i32
    %c0_i32_0 = arith.constant 0 : i32
    %c0_i32_1 = arith.constant 0 : i32
    return %c0_i32, %c0_i32_0 : i32, i32
  }
  func.func @transform_3(%arg0: i32) -> (i32, i32) {
    %c0_i32 = arith.constant 0 : i32
    %c0_i32_0 = arith.constant 0 : i32
    %c0_i32_1 = arith.constant 0 : i32
    return %c0_i32, %c0_i32_0 : i32, i32
  }
  func.func @transform_4(%arg0: i32) -> (i32, i32) {
    %c0_i32 = arith.constant 0 : i32
    %c0_i32_0 = arith.constant 0 : i32
    %c0_i32_1 = arith.constant 0 : i32
    return %c0_i32, %c0_i32_0 : i32, i32
  }
  func.func @transform_5(%arg0: i32) -> (i32, i32) {
    %c0_i32 = arith.constant 0 : i32
    %c0_i32_0 = arith.constant 0 : i32
    %c0_i32_1 = arith.constant 0 : i32
    return %c0_i32, %c0_i32_0 : i32, i32
  }
  func.func @transform_6(%arg0: i32) -> (i32, i32) {
    %c0_i32 = arith.constant 0 : i32
    %c0_i32_0 = arith.constant 0 : i32
    %c0_i32_1 = arith.constant 0 : i32
    return %c0_i32, %c0_i32_0 : i32, i32
  }
  func.func @transform_7(%arg0: i32) -> (i32, i32) {
    %c0_i32 = arith.constant 0 : i32
    %c0_i32_0 = arith.constant 0 : i32
    return %arg0, %c0_i32 : i32, i32
  }
}

module attributes {stable_mosaic.version = 11 : i64} {
  func.func @_emlp_kernel(%arg0: i32, %arg1: memref<8x4xf32, #tpu.memory_space<vmem>>, %arg2: memref<4x256xbf16, #tpu.memory_space<vmem>>, %arg3: memref<1x256xf32, #tpu.memory_space<vmem>>, %arg4: memref<256x256xbf16, #tpu.memory_space<vmem>>, %arg5: memref<1x256xf32, #tpu.memory_space<vmem>>, %arg6: memref<256x128xbf16, #tpu.memory_space<vmem>>, %arg7: memref<1x128xf32, #tpu.memory_space<vmem>>, %arg8: memref<8x128xbf16, #tpu.memory_space<vmem>>) attributes {dimension_semantics = [#tpu.dimension_semantics<parallel>], iteration_bounds = array<i64: 1>, scalar_prefetch = 0 : i64, scratch_operands = 0 : i64, tpu.core_type = #tpu.core_type<tc>, window_params = [{transform_indices = @transform_0, window_bounds = array<i64: 8, 4>}, {pipeline_mode = #tpu.pipeline_mode<synchronous>, transform_indices = @transform_1, window_bounds = array<i64: 4, 256>}, {pipeline_mode = #tpu.pipeline_mode<synchronous>, transform_indices = @transform_2, window_bounds = array<i64: 1, 256>}, {pipeline_mode = #tpu.pipeline_mode<synchronous>, transform_indices = @transform_3, window_bounds = array<i64: 256, 256>}, {pipeline_mode = #tpu.pipeline_mode<synchronous>, transform_indices = @transform_4, window_bounds = array<i64: 1, 256>}, {pipeline_mode = #tpu.pipeline_mode<synchronous>, transform_indices = @transform_5, window_bounds = array<i64: 256, 128>}, {pipeline_mode = #tpu.pipeline_mode<synchronous>, transform_indices = @transform_6, window_bounds = array<i64: 1, 128>}, {transform_indices = @transform_7, window_bounds = array<i64: 8, 128>}]} {
    %c0 = arith.constant 0 : index
    %c0_0 = arith.constant 0 : index
    %0 = vector.load %arg1[%c0, %c0_0] : memref<8x4xf32, #tpu.memory_space<vmem>>, vector<8x4xf32>
    %1 = arith.truncf %0 : vector<8x4xf32> to vector<8x4xbf16>
    %c0_1 = arith.constant 0 : index
    %c0_2 = arith.constant 0 : index
    %2 = vector.load %arg2[%c0_1, %c0_2] : memref<4x256xbf16, #tpu.memory_space<vmem>>, vector<4x256xbf16>
    %cst = arith.constant dense<0.000000e+00> : vector<8x256xf32>
    %3 = tpu.matmul %1, %2, %cst {dimension_numbers = #tpu.dot_dimension_numbers<[1], [0], [0], [1], [0, 0, 1, 1], [], []>} : vector<8x4xbf16>, vector<4x256xbf16>, vector<8x256xf32> -> vector<8x256xf32>
    %4 = arith.truncf %3 : vector<8x256xf32> to vector<8x256xbf16>
    %c0_3 = arith.constant 0 : index
    %c0_4 = arith.constant 0 : index
    %5 = vector.load %arg3[%c0_3, %c0_4] : memref<1x256xf32, #tpu.memory_space<vmem>>, vector<1x256xf32>
    %6 = arith.truncf %5 : vector<1x256xf32> to vector<1x256xbf16>
    %7 = vector.broadcast %6 : vector<1x256xbf16> to vector<8x256xbf16>
    %8 = arith.addf %4, %7 : vector<8x256xbf16>
    %cst_5 = arith.constant 0.000000e+00 : bf16
    %9 = vector.broadcast %cst_5 : bf16 to vector<8x256xbf16>
    %10 = arith.cmpf ogt, %8, %9 : vector<8x256xbf16>
    %cst_6 = arith.constant 0.000000e+00 : bf16
    %11 = vector.broadcast %cst_6 : bf16 to vector<8x256xbf16>
    %12 = arith.minimumf %8, %11 : vector<8x256xbf16>
    %13 = math.exp %12 : vector<8x256xbf16>
    %cst_7 = arith.constant 1.000000e+00 : bf16
    %14 = vector.broadcast %cst_7 : bf16 to vector<8x256xbf16>
    %15 = arith.subf %13, %14 : vector<8x256xbf16>
    %16 = arith.select %10, %8, %15 : vector<8x256xi1>, vector<8x256xbf16>
    %c0_8 = arith.constant 0 : index
    %c0_9 = arith.constant 0 : index
    %17 = vector.load %arg4[%c0_8, %c0_9] : memref<256x256xbf16, #tpu.memory_space<vmem>>, vector<256x256xbf16>
    %cst_10 = arith.constant dense<0.000000e+00> : vector<8x256xf32>
    %18 = tpu.matmul %16, %17, %cst_10 {dimension_numbers = #tpu.dot_dimension_numbers<[1], [0], [0], [1], [0, 0, 1, 1], [], []>} : vector<8x256xbf16>, vector<256x256xbf16>, vector<8x256xf32> -> vector<8x256xf32>
    %19 = arith.truncf %18 : vector<8x256xf32> to vector<8x256xbf16>
    %c0_11 = arith.constant 0 : index
    %c0_12 = arith.constant 0 : index
    %20 = vector.load %arg5[%c0_11, %c0_12] : memref<1x256xf32, #tpu.memory_space<vmem>>, vector<1x256xf32>
    %21 = arith.truncf %20 : vector<1x256xf32> to vector<1x256xbf16>
    %22 = vector.broadcast %21 : vector<1x256xbf16> to vector<8x256xbf16>
    %23 = arith.addf %19, %22 : vector<8x256xbf16>
    %cst_13 = arith.constant 0.000000e+00 : bf16
    %24 = vector.broadcast %cst_13 : bf16 to vector<8x256xbf16>
    %25 = arith.cmpf ogt, %23, %24 : vector<8x256xbf16>
    %cst_14 = arith.constant 0.000000e+00 : bf16
    %26 = vector.broadcast %cst_14 : bf16 to vector<8x256xbf16>
    %27 = arith.minimumf %23, %26 : vector<8x256xbf16>
    %28 = math.exp %27 : vector<8x256xbf16>
    %cst_15 = arith.constant 1.000000e+00 : bf16
    %29 = vector.broadcast %cst_15 : bf16 to vector<8x256xbf16>
    %30 = arith.subf %28, %29 : vector<8x256xbf16>
    %31 = arith.select %25, %23, %30 : vector<8x256xi1>, vector<8x256xbf16>
    %c0_16 = arith.constant 0 : index
    %c0_17 = arith.constant 0 : index
    %32 = vector.load %arg6[%c0_16, %c0_17] : memref<256x128xbf16, #tpu.memory_space<vmem>>, vector<256x128xbf16>
    %cst_18 = arith.constant dense<0.000000e+00> : vector<8x128xf32>
    %33 = tpu.matmul %31, %32, %cst_18 {dimension_numbers = #tpu.dot_dimension_numbers<[1], [0], [0], [1], [0, 0, 1, 1], [], []>} : vector<8x256xbf16>, vector<256x128xbf16>, vector<8x128xf32> -> vector<8x128xf32>
    %34 = arith.truncf %33 : vector<8x128xf32> to vector<8x128xbf16>
    %c0_19 = arith.constant 0 : index
    %c0_20 = arith.constant 0 : index
    %35 = vector.load %arg7[%c0_19, %c0_20] : memref<1x128xf32, #tpu.memory_space<vmem>>, vector<1x128xf32>
    %36 = arith.truncf %35 : vector<1x128xf32> to vector<1x128xbf16>
    %37 = vector.broadcast %36 : vector<1x128xbf16> to vector<8x128xbf16>
    %38 = arith.addf %34, %37 : vector<8x128xbf16>
    %c0_21 = arith.constant 0 : index
    %c0_22 = arith.constant 0 : index
    %39 = vector.load %arg8[%c0_21, %c0_22] : memref<8x128xbf16, #tpu.memory_space<vmem>>, vector<8x128xbf16>
    tpu.vector_store %arg8[%c0_21, %c0_22], %38 {strides = array<i32>} : memref<8x128xbf16, #tpu.memory_space<vmem>>, vector<8x128xbf16>,
    return
  }
  func.func @transform_0(%arg0: i32) -> (i32, i32) {
    %c0_i32 = arith.constant 0 : i32
    %c0_i32_0 = arith.constant 0 : i32
    return %arg0, %c0_i32 : i32, i32
  }
  func.func @transform_1(%arg0: i32) -> (i32, i32) {
    %c0_i32 = arith.constant 0 : i32
    %c0_i32_0 = arith.constant 0 : i32
    %c0_i32_1 = arith.constant 0 : i32
    return %c0_i32, %c0_i32_0 : i32, i32
  }
  func.func @transform_2(%arg0: i32) -> (i32, i32) {
    %c0_i32 = arith.constant 0 : i32
    %c0_i32_0 = arith.constant 0 : i32
    %c0_i32_1 = arith.constant 0 : i32
    return %c0_i32, %c0_i32_0 : i32, i32
  }
  func.func @transform_3(%arg0: i32) -> (i32, i32) {
    %c0_i32 = arith.constant 0 : i32
    %c0_i32_0 = arith.constant 0 : i32
    %c0_i32_1 = arith.constant 0 : i32
    return %c0_i32, %c0_i32_0 : i32, i32
  }
  func.func @transform_4(%arg0: i32) -> (i32, i32) {
    %c0_i32 = arith.constant 0 : i32
    %c0_i32_0 = arith.constant 0 : i32
    %c0_i32_1 = arith.constant 0 : i32
    return %c0_i32, %c0_i32_0 : i32, i32
  }
  func.func @transform_5(%arg0: i32) -> (i32, i32) {
    %c0_i32 = arith.constant 0 : i32
    %c0_i32_0 = arith.constant 0 : i32
    %c0_i32_1 = arith.constant 0 : i32
    return %c0_i32, %c0_i32_0 : i32, i32
  }
  func.func @transform_6(%arg0: i32) -> (i32, i32) {
    %c0_i32 = arith.constant 0 : i32
    %c0_i32_0 = arith.constant 0 : i32
    %c0_i32_1 = arith.constant 0 : i32
    return %c0_i32, %c0_i32_0 : i32, i32
  }
  func.func @transform_7(%arg0: i32) -> (i32, i32) {
    %c0_i32 = arith.constant 0 : i32
    %c0_i32_0 = arith.constant 0 : i32
    return %arg0, %c0_i32 : i32, i32
  }
}

</mosaic_0001>

<bundles_post_ra>
// kernel: tpu_custom_call.1
= control target key start
LH: loop header
LB: loop body
LE: loop exit
PB: predicated region body
PF: predicated region fallthrough
CT: control target
= control target key end

     0   :  { %12 = vsyncpa [#allocation3], 0  ;;  %s961_s0 = inlined_call_operand.vmem [shape: f32[8,4], index: 0, kind: input, shape index: {}]   ;;  %s962_s1 = inlined_call_operand.vmem [shape: bf16[4,256], index: 1, kind: input, shape index: {}]   ;;  %s963_s2 = inlined_call_operand.vmem [shape: f32[1,256], index: 2, kind: input, shape index: {}]   ;;  %s964_s3 = inlined_call_operand.hbm [shape: bf16[256,256], index: 3, kind: input, shape index: {}]   ;;  %s965_s4 = inlined_call_operand.vmem [shape: f32[1,256], index: 4, kind: input, shape index: {}]   ;;  %s966_s5 = inlined_call_operand.hbm [shape: bf16[256,128], index: 5, kind: input, shape index: {}]   ;;  %s967_s6 = inlined_call_operand.vmem [shape: f32[1,128], index: 6, kind: input, shape index: {}]   ;;  %s968_s7 = inlined_call_operand.hbm [shape: bf16[8,128], index: 7, kind: output, shape index: {}]  }
   0x1   :  { %13 = vsyncpa [#allocation6], 0 }
   0x2   :  { %14 = vsyncpa [#allocation4], 0  ;;  %s862_s24 = smov [#allocation2]  }
   0x3   :  { %s26_s25 = sshll.u32 %s862_s24, 4  ;;  %s27_s25 = int_to_ptr.vmem [resolvable:$true] %s26_s25 }
   0x4   :  { %s804_s26 = scalar_lea.vmem %s27_s25, 4096  ;;  %p809_p1 = scmp.lt.s32.totalorder %s27_s25, %s27_s25 }
   0x5   :  { %p805_p0 = scmp.ne.s32.totalorder %s27_s25, %s804_s26  ;;  %p810_p2 = scmp.lt.s32.totalorder %s804_s26, %s804_s26 }
   0x7   :  { %p811_p3 = por %p810_p2, %p809_p1 }
   0x9   :  { %p812_p4 = pnand %p811_p3, %p805_p0 }
   0xb   :  { %815 = shalt.err (!%p812_p4)
}
   0xc   :  { %s863_s27 = smov 128   ;;  %s864_s28 = smov 8  }
   0xd   :  { %32 = dma.hbm_to_vmem [thread:$0]  %s964_s3, 4096, %s27_s25, [#allocation3], %s863_s27, %s863_s27, %s864_s28  }
   0xe   :  { %s865_s8 = smov [#allocation5]  }
   0xf   :  { %s40_s9 = sshll.u32 %s865_s8, 4  ;;  %s41_s9 = int_to_ptr.vmem [resolvable:$true] %s40_s9 }
  0x10   :  { %s824_s10 = scalar_lea.vmem %s41_s9, 2048  ;;  %p829_p6 = scmp.lt.s32.totalorder %s41_s9, %s41_s9 }
  0x11   :  { %p825_p5 = scmp.ne.s32.totalorder %s41_s9, %s824_s10  ;;  %p830_p7 = scmp.lt.s32.totalorder %s824_s10, %s824_s10 }
  0x13   :  { %p831_p8 = por %p830_p7, %p829_p6 }
  0x15   :  { %p832_p9 = pnand %p831_p8, %p825_p5 }
  0x17   :  { %835 = shalt.err (!%p832_p9)
}
  0x18   :  { %s866_s11 = smov 64   ;;  %s867_s12 = smov 4  }
  0x19   :  { %46 = dma.hbm_to_vmem [thread:$0]  %s966_s5, 2048, %s41_s9, [#allocation6], %s866_s11, %s866_s11, %s867_s12  }
  0x1a   :  { %856 = dma.done.wait [#allocation3], 4096  }
  0x1b   :  { %857 = vsyncadd [#allocation3], 4294963200 }
  0x1c   :  { %858 = dma.done.wait [#allocation6], 2048  }
  0x1d   :  { %859 = vsyncadd [#allocation6], 4294965248  ;;  %v868_v0 = vmov 0   ;;  %vm73_vm0 = vcmask 1041408   ;;  %v57_v2 = vld [vmem:[%s961_s0] sm:$0xff]  ;;  %vm69_vm1 = vcmask 31744   ;;  %v125_v40 = vlaneseq }
  0x1e   :  { %112 = vmatprep.mubr.bf16.mxu0 %v868_v0  ;;  %v642_v1 = vld.sshfl [vmem:[%s962_s1] sm:$0x33 pattern:$0x76325410]  ;;  %v724_v5 = vld [vmem:[#allocation2 + $0x74] ss:$8 sps:$4 sm:$0xff]   ;;  %v58_v8 = vpack.c.bf16 %v57_v2, %v57_v2 }
  0x1f   :  { %v68_v3 = vcombine.high %v642_v1, %v642_v1  ;;  %v75_v4 = vsel %vm73_vm0, %v642_v1, 0  ;;  %v726_v6 = vld [vmem:[#allocation2 + $0x70] ss:$8 sps:$4 sm:$0xff]   ;;  %v727_v7 = vld [vmem:[#allocation2 + $0x64] ss:$8 sps:$4 sm:$0xff]   ;;  %359 = vmatprep.subr.bf16.mxu1 %v724_v5  ;;  %v924_v41 = vshrl.u32 %v125_v40, 7 }
  0x20   :  { %360 = vmatpush1.bf16.msra.mxu1 %v726_v6  ;;  %v729_v9 = vld [vmem:[#allocation2 + $0x60] ss:$8 sps:$4 sm:$0xff]   ;;  %v730_v10 = vld [vmem:[#allocation2 + $0x54] ss:$8 sps:$4 sm:$0xff]   ;;  %v732_v11 = vld [vmem:[#allocation2 + $0x50] ss:$8 sps:$4 sm:$0xff]  }
  0x21   :  { %643 = vmatprep.subr.msk.bf16.mxu0 %vm73_vm0, %v68_v3  ;;  %361 = vmatprep.subr.bf16.mxu1 %v727_v7  ;;  %v733_v12 = vld [vmem:[#allocation2 + $0x44] ss:$8 sps:$4 sm:$0xff]   ;;  %v735_v13 = vld [vmem:[#allocation2 + $0x40] ss:$8 sps:$4 sm:$0xff]   ;;  %v736_v14 = vld [vmem:[#allocation2 + $0x34] ss:$8 sps:$4 sm:$0xff]  }
  0x22   :  { %95 = vmatpush1.bf16.msra.mxu0 %v75_v4  ;;  %v738_v15 = vld [vmem:[#allocation2 + $0x30] ss:$8 sps:$4 sm:$0xff]   ;;  %v739_v16 = vld [vmem:[#allocation2 + $0x24] ss:$8 sps:$4 sm:$0xff]   ;;  %v741_v17 = vld [vmem:[#allocation2 + $0x20] ss:$8 sps:$4 sm:$0xff]  }
  0x23   :  { %v742_v18 = vld [vmem:[#allocation2 + $0x14] ss:$8 sps:$4 sm:$0xff]   ;;  %v744_v19 = vld [vmem:[#allocation2 + $0x10] ss:$8 sps:$4 sm:$0xff]   ;;  %v745_v20 = vld [vmem:[#allocation2 + $0x4] ss:$8 sps:$4 sm:$0xff]  }
  0x24   :  { %362 = vmatpush1.bf16.msra.mxu1 %v729_v9  ;;  %v747_v21 = vld [vmem:[#allocation2] ss:$8 sps:$4 sm:$0xff]   ;;  %v748_v22 = vld [vmem:[#allocation2 + $0xf4] ss:$8 sps:$4 sm:$0xff]   ;;  %v750_v23 = vld [vmem:[#allocation2 + $0xf0] ss:$8 sps:$4 sm:$0xff]  }
  0x25   :  { %644 = vmatmul.mubr.msk.bf16.vlgmr.msra.gmra.mxu0 %vm69_vm1, %v58_v8  ;;  %363 = vmatprep.subr.bf16.mxu1 %v730_v10  ;;  %v751_v24 = vld [vmem:[#allocation2 + $0xe4] ss:$8 sps:$4 sm:$0xff]   ;;  %v753_v25 = vld [vmem:[#allocation2 + $0xe0] ss:$8 sps:$4 sm:$0xff]   ;;  %v754_v26 = vld [vmem:[#allocation2 + $0xd4] ss:$8 sps:$4 sm:$0xff]  }
  0x26   :  { %v756_v27 = vld [vmem:[#allocation2 + $0xd0] ss:$8 sps:$4 sm:$0xff]   ;;  %v757_v28 = vld [vmem:[#allocation2 + $0xc4] ss:$8 sps:$4 sm:$0xff]   ;;  %v759_v29 = vld [vmem:[#allocation2 + $0xc0] ss:$8 sps:$4 sm:$0xff]  }
  0x27   :  { %v760_v30 = vld [vmem:[#allocation2 + $0xb4] ss:$8 sps:$4 sm:$0xff]   ;;  %v762_v31 = vld [vmem:[#allocation2 + $0xb0] ss:$8 sps:$4 sm:$0xff]   ;;  %v763_v32 = vld [vmem:[#allocation2 + $0xa4] ss:$8 sps:$4 sm:$0xff]  }
  0x28   :  { %364 = vmatpush1.bf16.msra.mxu1 %v732_v11  ;;  %v765_v33 = vld [vmem:[#allocation2 + $0xa0] ss:$8 sps:$4 sm:$0xff]   ;;  %v766_v34 = vld [vmem:[#allocation2 + $0x94] ss:$8 sps:$4 sm:$0xff]   ;;  %v768_v35 = vld [vmem:[#allocation2 + $0x90] ss:$8 sps:$4 sm:$0xff]  }
  0x29   :  { %365 = vmatprep.subr.bf16.mxu1 %v733_v12  ;;  %v769_v36 = vld [vmem:[#allocation2 + $0x84] ss:$8 sps:$4 sm:$0xff]   ;;  %v771_v37 = vld [vmem:[#allocation2 + $0x80] ss:$8 sps:$4 sm:$0xff]   ;;  %v772_v38 = vld [vmem:[#allocation5 + $0x78] sm:$0xff]   ;;  %v927_v42 = vsub.s32 0, %v924_v41 }
  0x2a   :  { %v773_v39 = vld [vmem:[#allocation5 + $0x38] sm:$0xff]   ;;  %693 = vmatprep.subr.bf16.mxu0 %v772_v38  ;;  %v123_v43 = vld [vmem:[%s963_s2] sm:$0x3]  ;;  %v131_v44 = vsub.s32 1, %v924_v41  ;;  %v869_v4 = vmov 1065369472  }
  0x2b   :  { %694 = vmatpush3.bf16.msra.mxu0 %v773_v39  ;;  %v128_v45 = vrot.slane %v123_v43, %v927_v42  ;;  %v774_v9 = vld [vmem:[#allocation5 + $0x70] sm:$0xff]   ;;  %v776_v11 = vld [vmem:[#allocation5 + $0x68] sm:$0xff]   ;;  %s870_s19 = smov [#allocation7]  }
  0x2c   :  { %366 = vmatpush1.bf16.msra.mxu1 %v735_v13  ;;  %v132_v46 = vrot.slane %v123_v43, %v131_v44  ;;  %v775_v10 = vld [vmem:[#allocation5 + $0x30] sm:$0xff]   ;;  %695 = vmatprep.subr.bf16.mxu0 %v774_v9  ;;  %v777_v12 = vld [vmem:[#allocation5 + $0x28] sm:$0xff]   ;;  %v778_v13 = vld [vmem:[#allocation5 + $0x60] sm:$0xff]   ;;  %s632_s20 = sshll.u32 %s870_s19, 4  ;;  %s633_s20 = int_to_ptr.vmem [resolvable:$true] %s632_s20 }
  0x2d   :  { %367 = vmatprep.subr.bf16.mxu1 %v736_v14  ;;  %v135_v47 = vpack.c.bf16 %v128_v45, %v128_v45  ;;  %v779_v14 = vld [vmem:[#allocation5 + $0x20] sm:$0xff]   ;;  %s836_s21 = scalar_lea.vmem %s633_s20, 64  ;;  %p841_p11 = scmp.lt.s32.totalorder %s633_s20, %s633_s20 }
  0x2e   :  { %v136_v48 = vpack.c.bf16 %v132_v46, %v132_v46  ;;  %p837_p10 = scmp.ne.s32.totalorder %s633_s20, %s836_s21  ;;  %p842_p12 = scmp.lt.s32.totalorder %s836_s21, %s836_s21 }
  0x2f   :  { %v138_v49 = vpack.i.b16 %v135_v47, %v135_v47  ;;  %696 = vmatpush3.bf16.msra.mxu0 %v775_v10 }
  0x30   :  { %368 = vmatpush1.bf16.msra.mxu1 %v738_v15  ;;  %v145_v50 = vpack.i.b16 %v136_v48, %v136_v48  ;;  %697 = vmatprep.subr.bf16.mxu0 %v776_v11  ;;  %v780_v15 = vld [vmem:[#allocation5 + $0x58] sm:$0xff]   ;;  %p843_p13 = por %p842_p12, %p841_p11 }
  0x31   :  { %369 = vmatprep.subr.bf16.mxu1 %v739_v16  ;;  %v143_v51 = vrot.slane %v138_v49, %v927_v42  ;;  %v781_v16 = vld [vmem:[#allocation5 + $0x18] sm:$0xff]  }
  0x32   :  { %v150_v54 = vrot.slane %v145_v50, %v927_v42  ;;  %p844_p0 = pnand %p843_p13, %p837_p10 }
  0x33   :  { %698 = vmatpush3.bf16.msra.mxu0 %v777_v12 }
  0x34   :  { %370 = vmatpush1.bf16.msra.mxu1 %v741_v17  ;;  %699 = vmatprep.subr.bf16.mxu0 %v778_v13  ;;  %v782_v17 = vld [vmem:[#allocation5 + $0x50] sm:$0xff]  }
  0x35   :  { %371 = vmatprep.subr.bf16.mxu1 %v742_v18  ;;  %v783_v18 = vld [vmem:[#allocation5 + $0x10] sm:$0xff]  }
  0x37   :  { %700 = vmatpush3.bf16.msra.mxu0 %v779_v14 }
  0x38   :  { %372 = vmatpush1.bf16.msra.mxu1 %v744_v19  ;;  %701 = vmatprep.subr.bf16.mxu0 %v780_v15  ;;  %v784_v19 = vld [vmem:[#allocation5 + $0x48] sm:$0xff]  }
  0x39   :  { %373 = vmatprep.subr.bf16.mxu1 %v745_v20  ;;  %v785_v20 = vld [vmem:[#allocation5 + $0x8] sm:$0xff]  }
  0x3b   :  { %702 = vmatpush3.bf16.msra.mxu0 %v781_v16 }
  0x3c   :  { %374 = vmatpush1.bf16.msra.mxu1 %v747_v21  ;;  %703 = vmatprep.subr.bf16.mxu0 %v782_v17  ;;  %v786_v21 = vld [vmem:[#allocation5 + $0x40] sm:$0xff]  }
  0x3d   :  { %375 = vmatprep.subr.bf16.mxu1 %v748_v22  ;;  %v787_v22 = vld [vmem:[#allocation5] sm:$0xff]  }
  0x3f   :  { %704 = vmatpush3.bf16.msra.mxu0 %v783_v18 }
  0x40   :  { %376 = vmatpush2.bf16.msra.mxu1 %v750_v23  ;;  %705 = vmatprep.subr.bf16.mxu0 %v784_v19  ;;  %v402_v23 = vld [vmem:[%s965_s4] sm:$0x3] }
  0x41   :  { %377 = vmatprep.subr.bf16.mxu1 %v751_v24  ;;  %v407_v24 = vrot.slane %v402_v23, %v927_v42 }
  0x43   :  { %706 = vmatpush3.bf16.msra.mxu0 %v785_v20 }
  0x44   :  { %378 = vmatpush2.bf16.msra.mxu1 %v753_v25  ;;  %707 = vmatprep.subr.bf16.mxu0 %v786_v21  ;;  %v411_v25 = vrot.slane %v402_v23, %v131_v44 }
  0x45   :  { %379 = vmatprep.subr.bf16.mxu1 %v754_v26  ;;  %v414_v26 = vpack.c.bf16 %v407_v24, %v407_v24 }
  0x47   :  { %708 = vmatpush3.bf16.msra.mxu0 %v787_v22 }
  0x48   :  { %380 = vmatpush2.bf16.msra.mxu1 %v756_v27  ;;  %v415_v27 = vpack.c.bf16 %v411_v25, %v411_v25 }
  0x49   :  { %381 = vmatprep.subr.bf16.mxu1 %v757_v28  ;;  %v417_v28 = vpack.i.b16 %v414_v26, %v414_v26 }
  0x4c   :  { %382 = vmatpush2.bf16.msra.mxu1 %v759_v29  ;;  %v424_v29 = vpack.i.b16 %v415_v27, %v415_v27 }
  0x4d   :  { %383 = vmatprep.subr.bf16.mxu1 %v760_v30  ;;  %v422_v30 = vrot.slane %v417_v28, %v927_v42 }
  0x50   :  { %384 = vmatpush2.bf16.msra.mxu1 %v762_v31 }
  0x51   :  { %385 = vmatprep.subr.bf16.mxu1 %v763_v32 }
  0x54   :  { %386 = vmatpush2.bf16.msra.mxu1 %v765_v33  ;;  %v429_v33 = vrot.slane %v424_v29, %v927_v42 }
  0x55   :  { %387 = vmatprep.subr.bf16.mxu1 %v766_v34 }
  0x58   :  { %388 = vmatpush2.bf16.msra.mxu1 %v768_v35 }
  0x59   :  { %389 = vmatprep.subr.bf16.mxu1 %v769_v36 }
  0x5c   :  { %390 = vmatpush2.bf16.msra.mxu1 %v771_v37 }
  0xe5   :  { %v114_v52 = vpop.f32.mrf.mxu0 }
  0xe6   :  { %v121_v53 = vpack.c.bf16 %v114_v52, %v114_v52 }
  0xe7   :  { %v116_v55 = vpop.f32.mrf.mxu0 }
  0xe8   :  { %v151_v56 = vadd.bf16 %v143_v51, %v121_v53  ;;  %v122_v57 = vpack.c.bf16 %v116_v55, %v116_v55  ;;  %v615_v51 = vld [vmem:[%s967_s6] sm:$0x1] }
  0xe9   :  { %v118_v58 = vpop.f32.mrf.mxu0 }
  0xea   :  { %v155_v59 = vmin.bf16 %v868_v0, %v151_v56  ;;  %v152_v60 = vadd.bf16 %v150_v54, %v122_v57  ;;  %vm153_vm3 = vcmp.gt.bf16.partialorder %v151_v56, 0 }
  0xeb   :  { %v119_v61 = vpop.f32.mrf.mxu0 }
  0xec   :  { %v158_v62 = vmul.bf16 1069105081, %v155_v59  ;;  %v156_v63 = vmin.bf16 %v868_v0, %v152_v60  ;;  %vm154_vm2 = vcmp.gt.bf16.partialorder %v152_v60, 0 }
  0xee   :  { %788 = vpow.bf16 %v158_v62  ;;  %v161_v1 = vmul.bf16 1069105081, %v156_v63 }
  0xf0   :  { %790 = vpow.bf16 %v161_v1 }
  0xfc   :  { %v789_v2 = vpop.eup %788 }
  0xfd   :  { %v163_v5 = vsub.bf16 %v789_v2, %v869_v4 }
  0xfe   :  { %v791_v3 = vpop.eup %790 }
  0xff   :  { %v164_v6 = vsub.bf16 %v791_v3, %v869_v4  ;;  %v165_v8 = vsel %vm153_vm3, %v151_v56, %v163_v5 }
 0x101   :  { %v166_v7 = vsel %vm154_vm2, %v152_v60, %v164_v6 }
 0x102   :  { %391 = vmatprep.mubr.bf16.mxu1 %v166_v7 }
 0x103   :  { %392 = vmatmul.mubr.bf16.vlgmr.msra.gmra.mxu1 %v165_v8 }
 0x1c3   :  { %v393_v31 = vpop.f32.mrf.mxu1 }
 0x1c4   :  { %v400_v32 = vpack.c.bf16 %v393_v31, %v393_v31 }
 0x1c5   :  { %v395_v34 = vpop.f32.mrf.mxu1 }
 0x1c6   :  { %v430_v35 = vadd.bf16 %v422_v30, %v400_v32  ;;  %v401_v36 = vpack.c.bf16 %v395_v34, %v395_v34 }
 0x1c7   :  { %v397_v37 = vpop.f32.mrf.mxu1 }
 0x1c8   :  { %v434_v38 = vmin.bf16 %v868_v0, %v430_v35  ;;  %v431_v39 = vadd.bf16 %v429_v33, %v401_v36  ;;  %vm432_vm5 = vcmp.gt.bf16.partialorder %v430_v35, 0 }
 0x1c9   :  { %v398_v40 = vpop.f32.mrf.mxu1 }
 0x1ca   :  { %v437_v41 = vmul.bf16 1069105081, %v434_v38  ;;  %v435_v43 = vmin.bf16 %v868_v0, %v431_v39  ;;  %vm433_vm4 = vcmp.gt.bf16.partialorder %v431_v39, 0  ;;  %v616_v0 = vpack.c.bf16 %v615_v51, %v615_v51 }
 0x1cc   :  { %792 = vpow.bf16 %v437_v41  ;;  %v440_v44 = vmul.bf16 1069105081, %v435_v43  ;;  %v618_v52 = vpack.i.b16 %v616_v0, %v616_v0 }
 0x1ce   :  { %794 = vpow.bf16 %v440_v44  ;;  %v623_v56 = vrot.slane %v618_v52, %v927_v42 }
 0x1da   :  { %v793_v45 = vpop.eup %792 }
 0x1db   :  { %v442_v47 = vsub.bf16 %v793_v45, %v869_v4 }
 0x1dc   :  { %v795_v46 = vpop.eup %794 }
 0x1dd   :  { %v443_v48 = vsub.bf16 %v795_v46, %v869_v4  ;;  %v444_v50 = vsel %vm432_vm5, %v430_v35, %v442_v47 }
 0x1df   :  { %v445_v49 = vsel %vm433_vm4, %v431_v39, %v443_v48 }
 0x1e0   :  { %606 = vmatprep.mubr.bf16.mxu0 %v445_v49 }
 0x1e1   :  { %607 = vmatmul.mubr.bf16.vlgmr.msra.gmra.mxu0 %v444_v50 }
 0x2a1   :  { %v709_v53 = vpop.f32.mrf.mxu0 }
 0x2a3   :  { %v710_v54 = vpop.f32.mrf.mxu0 }
 0x2a4   :  { %v711_v55 = vadd.f32 %v710_v54, %v709_v53 }
 0x2a5   :  { %v712_v57 = vpop.f32.mrf.mxu0 }
 0x2a6   :  { %v614_v58 = vpack.c.bf16 %v711_v55, %v711_v55 }
 0x2a7   :  { %v713_v59 = vpop.f32.mrf.mxu0 }
 0x2a8   :  { %v624_v60 = vadd.bf16 %v623_v56, %v614_v58 }
 0x2aa   :  { %625 = vst [vmem:[#allocation7] sm:$0xf] %v624_v60 }
 0x2ab   :  { %847 = shalt.err (!%p844_p0)
}
 0x2ac   :  { %635 = dma.vmem_to_hbm [thread:$0]  %s633_s20, 64, %s968_s7, [#allocation4]  }
 0x2ad   :  { %860 = dma.done.wait [#allocation4], 64  }
 0x2ae   :  { %861 = vsyncadd [#allocation4], 4294967232 }
 0x2af   :  { %639 = vsyncpa [#allocation3], 1 }
 0x2b0   :  { %640 = vsyncpa [#allocation6], 1 }
 0x2b1   :  { %641 = vsyncpa [#allocation4], 1 }

// kernel: tpu_custom_call.1
= control target key start
LH: loop header
LB: loop body
LE: loop exit
PB: predicated region body
PF: predicated region fallthrough
CT: control target
= control target key end

     0   :  { %12 = vsyncpa [#allocation3], 0  ;;  %s961_s0 = inlined_call_operand.vmem [shape: f32[8,4], index: 0, kind: input, shape index: {}]   ;;  %s962_s1 = inlined_call_operand.vmem [shape: bf16[4,256], index: 1, kind: input, shape index: {}]   ;;  %s963_s2 = inlined_call_operand.vmem [shape: f32[1,256], index: 2, kind: input, shape index: {}]   ;;  %s964_s3 = inlined_call_operand.hbm [shape: bf16[256,256], index: 3, kind: input, shape index: {}]   ;;  %s965_s4 = inlined_call_operand.vmem [shape: f32[1,256], index: 4, kind: input, shape index: {}]   ;;  %s966_s5 = inlined_call_operand.hbm [shape: bf16[256,128], index: 5, kind: input, shape index: {}]   ;;  %s967_s6 = inlined_call_operand.vmem [shape: f32[1,128], index: 6, kind: input, shape index: {}]   ;;  %s968_s7 = inlined_call_operand.hbm [shape: bf16[8,128], index: 7, kind: output, shape index: {}]  }
   0x1   :  { %13 = vsyncpa [#allocation6], 0 }
   0x2   :  { %14 = vsyncpa [#allocation4], 0  ;;  %s862_s24 = smov [#allocation2]  }
   0x3   :  { %s26_s25 = sshll.u32 %s862_s24, 4  ;;  %s27_s25 = int_to_ptr.vmem [resolvable:$true] %s26_s25 }
   0x4   :  { %s804_s26 = scalar_lea.vmem %s27_s25, 4096  ;;  %p809_p1 = scmp.lt.s32.totalorder %s27_s25, %s27_s25 }
   0x5   :  { %p805_p0 = scmp.ne.s32.totalorder %s27_s25, %s804_s26  ;;  %p810_p2 = scmp.lt.s32.totalorder %s804_s26, %s804_s26 }
   0x7   :  { %p811_p3 = por %p810_p2, %p809_p1 }
   0x9   :  { %p812_p4 = pnand %p811_p3, %p805_p0 }
   0xb   :  { %815 = shalt.err (!%p812_p4)
}
   0xc   :  { %s863_s27 = smov 128   ;;  %s864_s28 = smov 8  }
   0xd   :  { %32 = dma.hbm_to_vmem [thread:$0]  %s964_s3, 4096, %s27_s25, [#allocation3], %s863_s27, %s863_s27, %s864_s28  }
   0xe   :  { %s865_s8 = smov [#allocation5]  }
   0xf   :  { %s40_s9 = sshll.u32 %s865_s8, 4  ;;  %s41_s9 = int_to_ptr.vmem [resolvable:$true] %s40_s9 }
  0x10   :  { %s824_s10 = scalar_lea.vmem %s41_s9, 2048  ;;  %p829_p6 = scmp.lt.s32.totalorder %s41_s9, %s41_s9 }
  0x11   :  { %p825_p5 = scmp.ne.s32.totalorder %s41_s9, %s824_s10  ;;  %p830_p7 = scmp.lt.s32.totalorder %s824_s10, %s824_s10 }
  0x13   :  { %p831_p8 = por %p830_p7, %p829_p6 }
  0x15   :  { %p832_p9 = pnand %p831_p8, %p825_p5 }
  0x17   :  { %835 = shalt.err (!%p832_p9)
}
  0x18   :  { %s866_s11 = smov 64   ;;  %s867_s12 = smov 4  }
  0x19   :  { %46 = dma.hbm_to_vmem [thread:$0]  %s966_s5, 2048, %s41_s9, [#allocation6], %s866_s11, %s866_s11, %s867_s12  }
  0x1a   :  { %856 = dma.done.wait [#allocation3], 4096  }
  0x1b   :  { %857 = vsyncadd [#allocation3], 4294963200 }
  0x1c   :  { %858 = dma.done.wait [#allocation6], 2048  }
  0x1d   :  { %859 = vsyncadd [#allocation6], 4294965248  ;;  %v868_v0 = vmov 0   ;;  %vm73_vm0 = vcmask 1041408   ;;  %v57_v2 = vld [vmem:[%s961_s0] sm:$0xff]  ;;  %vm69_vm1 = vcmask 31744   ;;  %v125_v40 = vlaneseq }
  0x1e   :  { %112 = vmatprep.mubr.bf16.mxu0 %v868_v0  ;;  %v642_v1 = vld.sshfl [vmem:[%s962_s1] sm:$0x33 pattern:$0x76325410]  ;;  %v724_v5 = vld [vmem:[#allocation2 + $0x74] ss:$8 sps:$4 sm:$0xff]   ;;  %v58_v8 = vpack.c.bf16 %v57_v2, %v57_v2 }
  0x1f   :  { %v68_v3 = vcombine.high %v642_v1, %v642_v1  ;;  %v75_v4 = vsel %vm73_vm0, %v642_v1, 0  ;;  %v726_v6 = vld [vmem:[#allocation2 + $0x70] ss:$8 sps:$4 sm:$0xff]   ;;  %v727_v7 = vld [vmem:[#allocation2 + $0x64] ss:$8 sps:$4 sm:$0xff]   ;;  %359 = vmatprep.subr.bf16.mxu1 %v724_v5  ;;  %v924_v41 = vshrl.u32 %v125_v40, 7 }
  0x20   :  { %360 = vmatpush1.bf16.msra.mxu1 %v726_v6  ;;  %v729_v9 = vld [vmem:[#allocation2 + $0x60] ss:$8 sps:$4 sm:$0xff]   ;;  %v730_v10 = vld [vmem:[#allocation2 + $0x54] ss:$8 sps:$4 sm:$0xff]   ;;  %v732_v11 = vld [vmem:[#allocation2 + $0x50] ss:$8 sps:$4 sm:$0xff]  }
  0x21   :  { %643 = vmatprep.subr.msk.bf16.mxu0 %vm73_vm0, %v68_v3  ;;  %361 = vmatprep.subr.bf16.mxu1 %v727_v7  ;;  %v733_v12 = vld [vmem:[#allocation2 + $0x44] ss:$8 sps:$4 sm:$0xff]   ;;  %v735_v13 = vld [vmem:[#allocation2 + $0x40] ss:$8 sps:$4 sm:$0xff]   ;;  %v736_v14 = vld [vmem:[#allocation2 + $0x34] ss:$8 sps:$4 sm:$0xff]  }
  0x22   :  { %95 = vmatpush1.bf16.msra.mxu0 %v75_v4  ;;  %v738_v15 = vld [vmem:[#allocation2 + $0x30] ss:$8 sps:$4 sm:$0xff]   ;;  %v739_v16 = vld [vmem:[#allocation2 + $0x24] ss:$8 sps:$4 sm:$0xff]   ;;  %v741_v17 = vld [vmem:[#allocation2 + $0x20] ss:$8 sps:$4 sm:$0xff]  }
  0x23   :  { %v742_v18 = vld [vmem:[#allocation2 + $0x14] ss:$8 sps:$4 sm:$0xff]   ;;  %v744_v19 = vld [vmem:[#allocation2 + $0x10] ss:$8 sps:$4 sm:$0xff]   ;;  %v745_v20 = vld [vmem:[#allocation2 + $0x4] ss:$8 sps:$4 sm:$0xff]  }
  0x24   :  { %362 = vmatpush1.bf16.msra.mxu1 %v729_v9  ;;  %v747_v21 = vld [vmem:[#allocation2] ss:$8 sps:$4 sm:$0xff]   ;;  %v748_v22 = vld [vmem:[#allocation2 + $0xf4] ss:$8 sps:$4 sm:$0xff]   ;;  %v750_v23 = vld [vmem:[#allocation2 + $0xf0] ss:$8 sps:$4 sm:$0xff]  }
  0x25   :  { %644 = vmatmul.mubr.msk.bf16.vlgmr.msra.gmra.mxu0 %vm69_vm1, %v58_v8  ;;  %363 = vmatprep.subr.bf16.mxu1 %v730_v10  ;;  %v751_v24 = vld [vmem:[#allocation2 + $0xe4] ss:$8 sps:$4 sm:$0xff]   ;;  %v753_v25 = vld [vmem:[#allocation2 + $0xe0] ss:$8 sps:$4 sm:$0xff]   ;;  %v754_v26 = vld [vmem:[#allocation2 + $0xd4] ss:$8 sps:$4 sm:$0xff]  }
  0x26   :  { %v756_v27 = vld [vmem:[#allocation2 + $0xd0] ss:$8 sps:$4 sm:$0xff]   ;;  %v757_v28 = vld [vmem:[#allocation2 + $0xc4] ss:$8 sps:$4 sm:$0xff]   ;;  %v759_v29 = vld [vmem:[#allocation2 + $0xc0] ss:$8 sps:$4 sm:$0xff]  }
  0x27   :  { %v760_v30 = vld [vmem:[#allocation2 + $0xb4] ss:$8 sps:$4 sm:$0xff]   ;;  %v762_v31 = vld [vmem:[#allocation2 + $0xb0] ss:$8 sps:$4 sm:$0xff]   ;;  %v763_v32 = vld [vmem:[#allocation2 + $0xa4] ss:$8 sps:$4 sm:$0xff]  }
  0x28   :  { %364 = vmatpush1.bf16.msra.mxu1 %v732_v11  ;;  %v765_v33 = vld [vmem:[#allocation2 + $0xa0] ss:$8 sps:$4 sm:$0xff]   ;;  %v766_v34 = vld [vmem:[#allocation2 + $0x94] ss:$8 sps:$4 sm:$0xff]   ;;  %v768_v35 = vld [vmem:[#allocation2 + $0x90] ss:$8 sps:$4 sm:$0xff]  }
  0x29   :  { %365 = vmatprep.subr.bf16.mxu1 %v733_v12  ;;  %v769_v36 = vld [vmem:[#allocation2 + $0x84] ss:$8 sps:$4 sm:$0xff]   ;;  %v771_v37 = vld [vmem:[#allocation2 + $0x80] ss:$8 sps:$4 sm:$0xff]   ;;  %v772_v38 = vld [vmem:[#allocation5 + $0x78] sm:$0xff]   ;;  %v927_v42 = vsub.s32 0, %v924_v41 }
  0x2a   :  { %v773_v39 = vld [vmem:[#allocation5 + $0x38] sm:$0xff]   ;;  %693 = vmatprep.subr.bf16.mxu0 %v772_v38  ;;  %v123_v43 = vld [vmem:[%s963_s2] sm:$0x3]  ;;  %v131_v44 = vsub.s32 1, %v924_v41  ;;  %v869_v4 = vmov 1065369472  }
  0x2b   :  { %694 = vmatpush3.bf16.msra.mxu0 %v773_v39  ;;  %v128_v45 = vrot.slane %v123_v43, %v927_v42  ;;  %v774_v9 = vld [vmem:[#allocation5 + $0x70] sm:$0xff]   ;;  %v776_v11 = vld [vmem:[#allocation5 + $0x68] sm:$0xff]   ;;  %s870_s19 = smov [#allocation7]  }
  0x2c   :  { %366 = vmatpush1.bf16.msra.mxu1 %v735_v13  ;;  %v132_v46 = vrot.slane %v123_v43, %v131_v44  ;;  %v775_v10 = vld [vmem:[#allocation5 + $0x30] sm:$0xff]   ;;  %695 = vmatprep.subr.bf16.mxu0 %v774_v9  ;;  %v777_v12 = vld [vmem:[#allocation5 + $0x28] sm:$0xff]   ;;  %v778_v13 = vld [vmem:[#allocation5 + $0x60] sm:$0xff]   ;;  %s632_s20 = sshll.u32 %s870_s19, 4  ;;  %s633_s20 = int_to_ptr.vmem [resolvable:$true] %s632_s20 }
  0x2d   :  { %367 = vmatprep.subr.bf16.mxu1 %v736_v14  ;;  %v135_v47 = vpack.c.bf16 %v128_v45, %v128_v45  ;;  %v779_v14 = vld [vmem:[#allocation5 + $0x20] sm:$0xff]   ;;  %s836_s21 = scalar_lea.vmem %s633_s20, 64  ;;  %p841_p11 = scmp.lt.s32.totalorder %s633_s20, %s633_s20 }
  0x2e   :  { %v136_v48 = vpack.c.bf16 %v132_v46, %v132_v46  ;;  %p837_p10 = scmp.ne.s32.totalorder %s633_s20, %s836_s21  ;;  %p842_p12 = scmp.lt.s32.totalorder %s836_s21, %s836_s21 }
  0x2f   :  { %v138_v49 = vpack.i.b16 %v135_v47, %v135_v47  ;;  %696 = vmatpush3.bf16.msra.mxu0 %v775_v10 }
  0x30   :  { %368 = vmatpush1.bf16.msra.mxu1 %v738_v15  ;;  %v145_v50 = vpack.i.b16 %v136_v48, %v136_v48  ;;  %697 = vmatprep.subr.bf16.mxu0 %v776_v11  ;;  %v780_v15 = vld [vmem:[#allocation5 + $0x58] sm:$0xff]   ;;  %p843_p13 = por %p842_p12, %p841_p11 }
  0x31   :  { %369 = vmatprep.subr.bf16.mxu1 %v739_v16  ;;  %v143_v51 = vrot.slane %v138_v49, %v927_v42  ;;  %v781_v16 = vld [vmem:[#allocation5 + $0x18] sm:$0xff]  }
  0x32   :  { %v150_v54 = vrot.slane %v145_v50, %v927_v42  ;;  %p844_p0 = pnand %p843_p13, %p837_p10 }
  0x33   :  { %698 = vmatpush3.bf16.msra.mxu0 %v777_v12 }
  0x34   :  { %370 = vmatpush1.bf16.msra.mxu1 %v741_v17  ;;  %699 = vmatprep.subr.bf16.mxu0 %v778_v13  ;;  %v782_v17 = vld [vmem:[#allocation5 + $0x50] sm:$0xff]  }
  0x35   :  { %371 = vmatprep.subr.bf16.mxu1 %v742_v18  ;;  %v783_v18 = vld [vmem:[#allocation5 + $0x10] sm:$0xff]  }
  0x37   :  { %700 = vmatpush3.bf16.msra.mxu0 %v779_v14 }
  0x38   :  { %372 = vmatpush1.bf16.msra.mxu1 %v744_v19  ;;  %701 = vmatprep.subr.bf16.mxu0 %v780_v15  ;;  %v784_v19 = vld [vmem:[#allocation5 + $0x48] sm:$0xff]  }
  0x39   :  { %373 = vmatprep.subr.bf16.mxu1 %v745_v20  ;;  %v785_v20 = vld [vmem:[#allocation5 + $0x8] sm:$0xff]  }
  0x3b   :  { %702 = vmatpush3.bf16.msra.mxu0 %v781_v16 }
  0x3c   :  { %374 = vmatpush1.bf16.msra.mxu1 %v747_v21  ;;  %703 = vmatprep.subr.bf16.mxu0 %v782_v17  ;;  %v786_v21 = vld [vmem:[#allocation5 + $0x40] sm:$0xff]  }
  0x3d   :  { %375 = vmatprep.subr.bf16.mxu1 %v748_v22  ;;  %v787_v22 = vld [vmem:[#allocation5] sm:$0xff]  }
  0x3f   :  { %704 = vmatpush3.bf16.msra.mxu0 %v783_v18 }
  0x40   :  { %376 = vmatpush2.bf16.msra.mxu1 %v750_v23  ;;  %705 = vmatprep.subr.bf16.mxu0 %v784_v19  ;;  %v402_v23 = vld [vmem:[%s965_s4] sm:$0x3] }
  0x41   :  { %377 = vmatprep.subr.bf16.mxu1 %v751_v24  ;;  %v407_v24 = vrot.slane %v402_v23, %v927_v42 }
  0x43   :  { %706 = vmatpush3.bf16.msra.mxu0 %v785_v20 }
  0x44   :  { %378 = vmatpush2.bf16.msra.mxu1 %v753_v25  ;;  %707 = vmatprep.subr.bf16.mxu0 %v786_v21  ;;  %v411_v25 = vrot.slane %v402_v23, %v131_v44 }
  0x45   :  { %379 = vmatprep.subr.bf16.mxu1 %v754_v26  ;;  %v414_v26 = vpack.c.bf16 %v407_v24, %v407_v24 }
  0x47   :  { %708 = vmatpush3.bf16.msra.mxu0 %v787_v22 }
  0x48   :  { %380 = vmatpush2.bf16.msra.mxu1 %v756_v27  ;;  %v415_v27 = vpack.c.bf16 %v411_v25, %v411_v25 }
  0x49   :  { %381 = vmatprep.subr.bf16.mxu1 %v757_v28  ;;  %v417_v28 = vpack.i.b16 %v414_v26, %v414_v26 }
  0x4c   :  { %382 = vmatpush2.bf16.msra.mxu1 %v759_v29  ;;  %v424_v29 = vpack.i.b16 %v415_v27, %v415_v27 }
  0x4d   :  { %383 = vmatprep.subr.bf16.mxu1 %v760_v30  ;;  %v422_v30 = vrot.slane %v417_v28, %v927_v42 }
  0x50   :  { %384 = vmatpush2.bf16.msra.mxu1 %v762_v31 }
  0x51   :  { %385 = vmatprep.subr.bf16.mxu1 %v763_v32 }
  0x54   :  { %386 = vmatpush2.bf16.msra.mxu1 %v765_v33  ;;  %v429_v33 = vrot.slane %v424_v29, %v927_v42 }
  0x55   :  { %387 = vmatprep.subr.bf16.mxu1 %v766_v34 }
  0x58   :  { %388 = vmatpush2.bf16.msra.mxu1 %v768_v35 }
  0x59   :  { %389 = vmatprep.subr.bf16.mxu1 %v769_v36 }
  0x5c   :  { %390 = vmatpush2.bf16.msra.mxu1 %v771_v37 }
  0xe5   :  { %v114_v52 = vpop.f32.mrf.mxu0 }
  0xe6   :  { %v121_v53 = vpack.c.bf16 %v114_v52, %v114_v52 }
  0xe7   :  { %v116_v55 = vpop.f32.mrf.mxu0 }
  0xe8   :  { %v151_v56 = vadd.bf16 %v143_v51, %v121_v53  ;;  %v122_v57 = vpack.c.bf16 %v116_v55, %v116_v55  ;;  %v615_v51 = vld [vmem:[%s967_s6] sm:$0x1] }
  0xe9   :  { %v118_v58 = vpop.f32.mrf.mxu0 }
  0xea   :  { %v155_v59 = vmin.bf16 %v868_v0, %v151_v56  ;;  %v152_v60 = vadd.bf16 %v150_v54, %v122_v57  ;;  %vm153_vm3 = vcmp.gt.bf16.partialorder %v151_v56, 0 }
  0xeb   :  { %v119_v61 = vpop.f32.mrf.mxu0 }
  0xec   :  { %v158_v62 = vmul.bf16 1069105081, %v155_v59  ;;  %v156_v63 = vmin.bf16 %v868_v0, %v152_v60  ;;  %vm154_vm2 = vcmp.gt.bf16.partialorder %v152_v60, 0 }
  0xee   :  { %788 = vpow.bf16 %v158_v62  ;;  %v161_v1 = vmul.bf16 1069105081, %v156_v63 }
  0xf0   :  { %790 = vpow.bf16 %v161_v1 }
  0xfc   :  { %v789_v2 = vpop.eup %788 }
  0xfd   :  { %v163_v5 = vsub.bf16 %v789_v2, %v869_v4 }
  0xfe   :  { %v791_v3 = vpop.eup %790 }
  0xff   :  { %v164_v6 = vsub.bf16 %v791_v3, %v869_v4  ;;  %v165_v8 = vsel %vm153_vm3, %v151_v56, %v163_v5 }
 0x101   :  { %v166_v7 = vsel %vm154_vm2, %v152_v60, %v164_v6 }
 0x102   :  { %391 = vmatprep.mubr.bf16.mxu1 %v166_v7 }
 0x103   :  { %392 = vmatmul.mubr.bf16.vlgmr.msra.gmra.mxu1 %v165_v8 }
 0x1c3   :  { %v393_v31 = vpop.f32.mrf.mxu1 }
 0x1c4   :  { %v400_v32 = vpack.c.bf16 %v393_v31, %v393_v31 }
 0x1c5   :  { %v395_v34 = vpop.f32.mrf.mxu1 }
 0x1c6   :  { %v430_v35 = vadd.bf16 %v422_v30, %v400_v32  ;;  %v401_v36 = vpack.c.bf16 %v395_v34, %v395_v34 }
 0x1c7   :  { %v397_v37 = vpop.f32.mrf.mxu1 }
 0x1c8   :  { %v434_v38 = vmin.bf16 %v868_v0, %v430_v35  ;;  %v431_v39 = vadd.bf16 %v429_v33, %v401_v36  ;;  %vm432_vm5 = vcmp.gt.bf16.partialorder %v430_v35, 0 }
 0x1c9   :  { %v398_v40 = vpop.f32.mrf.mxu1 }
 0x1ca   :  { %v437_v41 = vmul.bf16 1069105081, %v434_v38  ;;  %v435_v43 = vmin.bf16 %v868_v0, %v431_v39  ;;  %vm433_vm4 = vcmp.gt.bf16.partialorder %v431_v39, 0  ;;  %v616_v0 = vpack.c.bf16 %v615_v51, %v615_v51 }
 0x1cc   :  { %792 = vpow.bf16 %v437_v41  ;;  %v440_v44 = vmul.bf16 1069105081, %v435_v43  ;;  %v618_v52 = vpack.i.b16 %v616_v0, %v616_v0 }
 0x1ce   :  { %794 = vpow.bf16 %v440_v44  ;;  %v623_v56 = vrot.slane %v618_v52, %v927_v42 }
 0x1da   :  { %v793_v45 = vpop.eup %792 }
 0x1db   :  { %v442_v47 = vsub.bf16 %v793_v45, %v869_v4 }
 0x1dc   :  { %v795_v46 = vpop.eup %794 }
 0x1dd   :  { %v443_v48 = vsub.bf16 %v795_v46, %v869_v4  ;;  %v444_v50 = vsel %vm432_vm5, %v430_v35, %v442_v47 }
 0x1df   :  { %v445_v49 = vsel %vm433_vm4, %v431_v39, %v443_v48 }
 0x1e0   :  { %606 = vmatprep.mubr.bf16.mxu0 %v445_v49 }
 0x1e1   :  { %607 = vmatmul.mubr.bf16.vlgmr.msra.gmra.mxu0 %v444_v50 }
 0x2a1   :  { %v709_v53 = vpop.f32.mrf.mxu0 }
 0x2a3   :  { %v710_v54 = vpop.f32.mrf.mxu0 }
 0x2a4   :  { %v711_v55 = vadd.f32 %v710_v54, %v709_v53 }
 0x2a5   :  { %v712_v57 = vpop.f32.mrf.mxu0 }
 0x2a6   :  { %v614_v58 = vpack.c.bf16 %v711_v55, %v711_v55 }
 0x2a7   :  { %v713_v59 = vpop.f32.mrf.mxu0 }
 0x2a8   :  { %v624_v60 = vadd.bf16 %v623_v56, %v614_v58 }
 0x2aa   :  { %625 = vst [vmem:[#allocation7] sm:$0xf] %v624_v60 }
 0x2ab   :  { %847 = shalt.err (!%p844_p0)
}
 0x2ac   :  { %635 = dma.vmem_to_hbm [thread:$0]  %s633_s20, 64, %s968_s7, [#allocation4]  }
 0x2ad   :  { %860 = dma.done.wait [#allocation4], 64  }
 0x2ae   :  { %861 = vsyncadd [#allocation4], 4294967232 }
 0x2af   :  { %639 = vsyncpa [#allocation3], 1 }
 0x2b0   :  { %640 = vsyncpa [#allocation6], 1 }
 0x2b1   :  { %641 = vsyncpa [#allocation4], 1 }

</bundles_post_ra>
